<compile_context>
chip_gen: v7x
topology: tpu7x:2x2x1
jax: 0.10.0
libtpu: 0.0.40
codegen_flags: <defaults>
</compile_context>

<pallas_src>
import functools
import math

import jax
import jax.numpy as jnp
from jax.experimental import pallas as pl
from jax.experimental.pallas import tpu as pltpu


def _action_attention_kernel(q_ref, kf_ref, wq_ref, bq_ref, wkt_ref, bk_ref,
                             wa_ref, ba_ref, g_ref, o_ref, *, scale):
    # q_ref  : (TB, D)       queries for this batch block
    # kf_ref : (TB, K*D)     keys, key axis flattened onto lanes (lane-dense)
    # wq_ref : (D, D), bq_ref: (1, D)
    # wkt_ref: (D, K*D)      Wk^T tiled K times along the lane axis
    # bk_ref : (1, D)
    # wa_ref : (D, K*A)      Wa tiled K times along the lane axis
    # ba_ref : (1, K*A)
    # g_ref  : (K*D, K*A)    0/1 matrix: reduce D lanes per key + replicate x A
    # o_ref  : (TB, K*A)
    x = q_ref[...]                         # (TB, D)
    kf = kf_ref[...]                       # (TB, K*D)

    # Projected, pre-scaled query:  qv = (x @ Wq + bq) / sqrt(D)
    qv = (jnp.dot(x, wq_ref[...], preferred_element_type=jnp.float32)
          + bq_ref[...]) * scale                                          # (TB, D)

    # Action logits, already replicated K times along the lane axis
    # (weights/bias were pre-tiled host-side).
    av_t = (jnp.dot(x, wa_ref[...], preferred_element_type=jnp.float32)
            + ba_ref[...])                                                # (TB, K*A)

    # Key projection folded onto the query:
    #   s[b,k] = (qv @ Wk^T) . keys[b,k]  +  qv . bk
    qk_t = jnp.dot(qv, wkt_ref[...], preferred_element_type=jnp.float32)  # (TB, K*D)
    cbias = jnp.sum(qv * bk_ref[...], axis=-1, keepdims=True)             # (TB, 1)

    prod = kf.astype(jnp.float32) * qk_t                                  # (TB, K*D)  VPU, lane-dense

    # Per-key reduce over D lanes + replicate each score A times: one MXU matmul
    # (tanh commutes with the 0/1 replication, so expand before tanh).
    s_exp = (jnp.dot(prod, g_ref[...], preferred_element_type=jnp.float32)
             + cbias)                                                     # (TB, K*A)

    o_ref[...] = (jnp.tanh(s_exp) * av_t).astype(o_ref.dtype)             # (TB, K*A)


def _round_up(x, m):
    return ((x + m - 1) // m) * m


def action_attention_v3(queries, keys, params, *, block_b=1024):
    """queries: (B, D), keys: (B, K, D) -> (B, K, A). Matches the torch module."""
    B, D = queries.shape
    _, K, _ = keys.shape
    A = params["wa"].shape[1]
    dtype = queries.dtype
    scale = 1.0 / math.sqrt(D)

    wq = params["wq"].astype(dtype)                 # (D, D)
    bq = params["bq"].reshape(1, D).astype(dtype)   # (1, D)
    wk = params["wk"].astype(dtype)                 # (D, D)
    bk = params["bk"].reshape(1, D).astype(dtype)   # (1, D)
    wa = params["wa"].astype(dtype)                 # (D, A)
    ba = params["ba"].reshape(1, A).astype(dtype)   # (1, A)

    # One-time host-side weight prep so every kernel operand is lane-dense.
    wkt_rep = jnp.tile(wk.T, (1, K))                # (D, K*D)
    wa_rep = jnp.tile(wa, (1, K))                   # (D, K*A)
    ba_rep = jnp.tile(ba, (1, K))                   # (1, K*A)
    gmat = jnp.kron(jnp.eye(K, dtype=jnp.float32),
                    jnp.ones((D, A), jnp.float32))  # (K*D, K*A)

    # Batch tiling: TB rows per grid step; pad B up to a whole number of blocks.
    tb = block_b if B >= block_b else _round_up(B, 8)
    b_pad = _round_up(B, tb)
    n_blocks = b_pad // tb

    q_p = queries if b_pad == B else jnp.pad(queries, ((0, b_pad - B), (0, 0)))
    k_p = keys if b_pad == B else jnp.pad(keys, ((0, b_pad - B), (0, 0), (0, 0)))
    kf = k_p.reshape(b_pad, K * D)                  # free row-major flatten

    kernel = functools.partial(_action_attention_kernel, scale=scale)

    out_flat = pl.pallas_call(
        kernel,
        out_shape=jax.ShapeDtypeStruct((b_pad, K * A), dtype),
        grid_spec=pltpu.PrefetchScalarGridSpec(
            num_scalar_prefetch=0,
            grid=(n_blocks,),
            in_specs=[
                pl.BlockSpec((tb, D), lambda i: (i, 0)),          # queries block
                pl.BlockSpec((tb, K * D), lambda i: (i, 0)),      # keys block (lane-flat)
                pl.BlockSpec((D, D), lambda i: (0, 0)),           # Wq
                pl.BlockSpec((1, D), lambda i: (0, 0)),           # bq
                pl.BlockSpec((D, K * D), lambda i: (0, 0)),       # Wk^T tiled
                pl.BlockSpec((1, D), lambda i: (0, 0)),           # bk
                pl.BlockSpec((D, K * A), lambda i: (0, 0)),       # Wa tiled
                pl.BlockSpec((1, K * A), lambda i: (0, 0)),       # ba tiled
                pl.BlockSpec((K * D, K * A), lambda i: (0, 0)),   # gather/expand matrix
            ],
            out_specs=pl.BlockSpec((tb, K * A), lambda i: (i, 0)),
        ),
        compiler_params=pltpu.CompilerParams(
            # Single batch-block axis; "parallel" lets megacore parts (v7x)
            # shard grid steps across TensorCores.
            dimension_semantics=("parallel",),
        ),
    )(q_p, kf, wq, bq, wkt_rep, bk, wa_rep, ba_rep, gmat)

    return out_flat[:B].reshape(B, K, A)


def _reference(queries, keys, params):
    """Pure-JAX replica of the PyTorch forward for verification."""
    B, D = queries.shape
    A = params["wa"].shape[1]
    a = queries @ params["wa"] + params["ba"]                     # (B, A)
    q = (queries @ params["wq"] + params["bq"]).reshape(B, 1, D)  # (B, 1, D)
    k = keys @ params["wk"] + params["bk"]                        # (B, K, D)
    v = jnp.einsum("bqd,bkd->bqk", q, k) / math.sqrt(D)           # (B, 1, K)
    v = jnp.tanh(v)
    v = jnp.einsum("bqk,bqa->bka", v, a.reshape(B, 1, A))         # (B, K, A)
    return v


def _init_params(key, model_dim, n_actions):
    ks = jax.random.split(key, 6)
    scale = 1.0 / math.sqrt(model_dim)
    return {
        "wq": jax.random.uniform(ks[0], (model_dim, model_dim), jnp.float32, -scale, scale),
        "bq": jax.random.uniform(ks[1], (1, model_dim), jnp.float32, -scale, scale),
        "wk": jax.random.uniform(ks[2], (model_dim, model_dim), jnp.float32, -scale, scale),
        "bk": jax.random.uniform(ks[3], (1, model_dim), jnp.float32, -scale, scale),
        "wa": jax.random.uniform(ks[4], (model_dim, n_actions), jnp.float32, -scale, scale),
        "ba": jax.random.uniform(ks[5], (1, n_actions), jnp.float32, -scale, scale),
    }


if __name__ == "__main__":
    D, A, K = 32, 8, 8   # model_dim, n_actions, n_keys

    key = jax.random.PRNGKey(0)
    kq, kk, kp, kq2, kk2 = jax.random.split(key, 5)
    params = _init_params(kp, D, A)

    # Small case (tiny batch padded up to one 8-row block, single grid step).
    B = 2
    queries = jax.random.normal(kq, (B, D), jnp.float32)
    keys = jax.random.normal(kk, (B, K, D), jnp.float32)
    out = jax.block_until_ready(action_attention_v3(queries, keys, params))
    ref = _reference(queries, keys, params)
    assert out.shape == (B, K, A), out.shape
    # Tolerance loosened slightly vs. the naive path: the kernel folds Wk onto
    # the query (float reassociation), which is semantically identical.
    assert jnp.allclose(out, ref, atol=1e-4, rtol=1e-4), "mismatch vs reference (small)"

    # Larger case: multiple grid steps plus a partially padded trailing block.
    B2 = 300
    q2 = jax.random.normal(kq2, (B2, D), jnp.float32)
    k2 = jax.random.normal(kk2, (B2, K, D), jnp.float32)
    out2 = jax.block_until_ready(action_attention_v3(q2, k2, params, block_b=128))
    ref2 = _reference(q2, k2, params)
    assert out2.shape == (B2, K, A), out2.shape
    assert jnp.allclose(out2, ref2, atol=1e-4, rtol=1e-4), "mismatch vs reference (large)"

    print("KERNEL_OK")
</pallas_src>

<mosaic_0001>
module attributes {stable_mosaic.version = 11 : i64} {
  func.func @_action_attention_kernel(%arg0: i32, %arg1: memref<8x32xf32, #tpu.memory_space<vmem>>, %arg2: memref<8x256xf32, #tpu.memory_space<vmem>>, %arg3: memref<32x32xf32, #tpu.memory_space<vmem>>, %arg4: memref<1x32xf32, #tpu.memory_space<vmem>>, %arg5: memref<32x256xf32, #tpu.memory_space<vmem>>, %arg6: memref<1x32xf32, #tpu.memory_space<vmem>>, %arg7: memref<32x64xf32, #tpu.memory_space<vmem>>, %arg8: memref<1x64xf32, #tpu.memory_space<vmem>>, %arg9: memref<256x64xf32, #tpu.memory_space<vmem>>, %arg10: memref<8x64xf32, #tpu.memory_space<vmem>>) attributes {dimension_semantics = [#tpu.dimension_semantics<parallel>], iteration_bounds = array<i64: 1>, scalar_prefetch = 0 : i64, scratch_operands = 0 : i64, tpu.core_type = #tpu.core_type<tc>, window_params = [{transform_indices = @transform_0, window_bounds = array<i64: 8, 32>}, {transform_indices = @transform_1, window_bounds = array<i64: 8, 256>}, {pipeline_mode = #tpu.pipeline_mode<synchronous>, transform_indices = @transform_2, window_bounds = array<i64: 32, 32>}, {pipeline_mode = #tpu.pipeline_mode<synchronous>, transform_indices = @transform_3, window_bounds = array<i64: 1, 32>}, {pipeline_mode = #tpu.pipeline_mode<synchronous>, transform_indices = @transform_4, window_bounds = array<i64: 32, 256>}, {pipeline_mode = #tpu.pipeline_mode<synchronous>, transform_indices = @transform_5, window_bounds = array<i64: 1, 32>}, {pipeline_mode = #tpu.pipeline_mode<synchronous>, transform_indices = @transform_6, window_bounds = array<i64: 32, 64>}, {pipeline_mode = #tpu.pipeline_mode<synchronous>, transform_indices = @transform_7, window_bounds = array<i64: 1, 64>}, {pipeline_mode = #tpu.pipeline_mode<synchronous>, transform_indices = @transform_8, window_bounds = array<i64: 256, 64>}, {transform_indices = @transform_9, window_bounds = array<i64: 8, 64>}]} {
    %c0 = arith.constant 0 : index
    %c0_0 = arith.constant 0 : index
    %0 = vector.load %arg1[%c0, %c0_0] : memref<8x32xf32, #tpu.memory_space<vmem>>, vector<8x32xf32>
    %c0_1 = arith.constant 0 : index
    %c0_2 = arith.constant 0 : index
    %1 = vector.load %arg2[%c0_1, %c0_2] : memref<8x256xf32, #tpu.memory_space<vmem>>, vector<8x256xf32>
    %c0_3 = arith.constant 0 : index
    %c0_4 = arith.constant 0 : index
    %2 = vector.load %arg3[%c0_3, %c0_4] : memref<32x32xf32, #tpu.memory_space<vmem>>, vector<32x32xf32>
    %cst = arith.constant dense<0.000000e+00> : vector<8x32xf32>
    %3 = tpu.matmul %0, %2, %cst {dimension_numbers = #tpu.dot_dimension_numbers<[1], [0], [0], [1], [0, 0, 1, 1], [], []>} : vector<8x32xf32>, vector<32x32xf32>, vector<8x32xf32> -> vector<8x32xf32>
    %c0_5 = arith.constant 0 : index
    %c0_6 = arith.constant 0 : index
    %4 = vector.load %arg4[%c0_5, %c0_6] : memref<1x32xf32, #tpu.memory_space<vmem>>, vector<1x32xf32>
    %5 = vector.broadcast %4 : vector<1x32xf32> to vector<8x32xf32>
    %6 = arith.addf %3, %5 : vector<8x32xf32>
    %cst_7 = arith.constant 0.176776692 : f32
    %7 = vector.broadcast %cst_7 : f32 to vector<8x32xf32>
    %8 = arith.mulf %6, %7 : vector<8x32xf32>
    %c0_8 = arith.constant 0 : index
    %c0_9 = arith.constant 0 : index
    %9 = vector.load %arg7[%c0_8, %c0_9] : memref<32x64xf32, #tpu.memory_space<vmem>>, vector<32x64xf32>
    %cst_10 = arith.constant dense<0.000000e+00> : vector<8x64xf32>
    %10 = tpu.matmul %0, %9, %cst_10 {dimension_numbers = #tpu.dot_dimension_numbers<[1], [0], [0], [1], [0, 0, 1, 1], [], []>} : vector<8x32xf32>, vector<32x64xf32>, vector<8x64xf32> -> vector<8x64xf32>
    %c0_11 = arith.constant 0 : index
    %c0_12 = arith.constant 0 : index
    %11 = vector.load %arg8[%c0_11, %c0_12] : memref<1x64xf32, #tpu.memory_space<vmem>>, vector<1x64xf32>
    %12 = vector.broadcast %11 : vector<1x64xf32> to vector<8x64xf32>
    %13 = arith.addf %10, %12 : vector<8x64xf32>
    %c0_13 = arith.constant 0 : index
    %c0_14 = arith.constant 0 : index
    %14 = vector.load %arg5[%c0_13, %c0_14] : memref<32x256xf32, #tpu.memory_space<vmem>>, vector<32x256xf32>
    %cst_15 = arith.constant dense<0.000000e+00> : vector<8x256xf32>
    %15 = tpu.matmul %8, %14, %cst_15 {dimension_numbers = #tpu.dot_dimension_numbers<[1], [0], [0], [1], [0, 0, 1, 1], [], []>} : vector<8x32xf32>, vector<32x256xf32>, vector<8x256xf32> -> vector<8x256xf32>
    %c0_16 = arith.constant 0 : index
    %c0_17 = arith.constant 0 : index
    %16 = vector.load %arg6[%c0_16, %c0_17] : memref<1x32xf32, #tpu.memory_space<vmem>>, vector<1x32xf32>
    %17 = vector.broadcast %16 : vector<1x32xf32> to vector<8x32xf32>
    %18 = arith.mulf %8, %17 : vector<8x32xf32>
    %cst_18 = arith.constant dense<0.000000e+00> : vector<8xf32>
    %19 = vector.multi_reduction <add>, %18, %cst_18 [1] : vector<8x32xf32> to vector<8xf32>
    %20 = vector.shape_cast %19 : vector<8xf32> to vector<8x1xf32>
    %21 = arith.mulf %1, %15 : vector<8x256xf32>
    %c0_19 = arith.constant 0 : index
    %c0_20 = arith.constant 0 : index
    %22 = vector.load %arg9[%c0_19, %c0_20] : memref<256x64xf32, #tpu.memory_space<vmem>>, vector<256x64xf32>
    %cst_21 = arith.constant dense<0.000000e+00> : vector<8x64xf32>
    %23 = tpu.matmul %21, %22, %cst_21 {dimension_numbers = #tpu.dot_dimension_numbers<[1], [0], [0], [1], [0, 0, 1, 1], [], []>} : vector<8x256xf32>, vector<256x64xf32>, vector<8x64xf32> -> vector<8x64xf32>
    %24 = vector.broadcast %20 : vector<8x1xf32> to vector<8x64xf32>
    %25 = arith.addf %23, %24 : vector<8x64xf32>
    %26 = math.tanh %25 : vector<8x64xf32>
    %27 = arith.mulf %26, %13 : vector<8x64xf32>
    %c0_22 = arith.constant 0 : index
    %c0_23 = arith.constant 0 : index
    %28 = vector.load %arg10[%c0_22, %c0_23] : memref<8x64xf32, #tpu.memory_space<vmem>>, vector<8x64xf32>
    tpu.vector_store %arg10[%c0_22, %c0_23], %27 {strides = array<i32>} : memref<8x64xf32, #tpu.memory_space<vmem>>, vector<8x64xf32>,
    return
  }
  func.func @transform_0(%arg0: i32) -> (i32, i32) {
    %c0_i32 = arith.constant 0 : i32
    %c0_i32_0 = arith.constant 0 : i32
    return %arg0, %c0_i32 : i32, i32
  }
  func.func @transform_1(%arg0: i32) -> (i32, i32) {
    %c0_i32 = arith.constant 0 : i32
    %c0_i32_0 = arith.constant 0 : i32
    return %arg0, %c0_i32 : i32, i32
  }
  func.func @transform_2(%arg0: i32) -> (i32, i32) {
    %c0_i32 = arith.constant 0 : i32
    %c0_i32_0 = arith.constant 0 : i32
    %c0_i32_1 = arith.constant 0 : i32
    return %c0_i32, %c0_i32_0 : i32, i32
  }
  func.func @transform_3(%arg0: i32) -> (i32, i32) {
    %c0_i32 = arith.constant 0 : i32
    %c0_i32_0 = arith.constant 0 : i32
    %c0_i32_1 = arith.constant 0 : i32
    return %c0_i32, %c0_i32_0 : i32, i32
  }
  func.func @transform_4(%arg0: i32) -> (i32, i32) {
    %c0_i32 = arith.constant 0 : i32
    %c0_i32_0 = arith.constant 0 : i32
    %c0_i32_1 = arith.constant 0 : i32
    return %c0_i32, %c0_i32_0 : i32, i32
  }
  func.func @transform_5(%arg0: i32) -> (i32, i32) {
    %c0_i32 = arith.constant 0 : i32
    %c0_i32_0 = arith.constant 0 : i32
    %c0_i32_1 = arith.constant 0 : i32
    return %c0_i32, %c0_i32_0 : i32, i32
  }
  func.func @transform_6(%arg0: i32) -> (i32, i32) {
    %c0_i32 = arith.constant 0 : i32
    %c0_i32_0 = arith.constant 0 : i32
    %c0_i32_1 = arith.constant 0 : i32
    return %c0_i32, %c0_i32_0 : i32, i32
  }
  func.func @transform_7(%arg0: i32) -> (i32, i32) {
    %c0_i32 = arith.constant 0 : i32
    %c0_i32_0 = arith.constant 0 : i32
    %c0_i32_1 = arith.constant 0 : i32
    return %c0_i32, %c0_i32_0 : i32, i32
  }
  func.func @transform_8(%arg0: i32) -> (i32, i32) {
    %c0_i32 = arith.constant 0 : i32
    %c0_i32_0 = arith.constant 0 : i32
    %c0_i32_1 = arith.constant 0 : i32
    return %c0_i32, %c0_i32_0 : i32, i32
  }
  func.func @transform_9(%arg0: i32) -> (i32, i32) {
    %c0_i32 = arith.constant 0 : i32
    %c0_i32_0 = arith.constant 0 : i32
    return %arg0, %c0_i32 : i32, i32
  }
}

</mosaic_0001>

<bundles_post_ra>
// kernel: tpu_custom_call.1
= control target key start
LH: loop header
LB: loop body
LE: loop exit
PB: predicated region body
PF: predicated region fallthrough
CT: control target
= control target key end

     0   :  { %v573_v3 = vmov 0.0|0.0   ;;  %vm574_vm0 = vmmov 0   ;;  %v575_v6 = vmov 0.0   ;;  %s810_s0 = inlined_call_operand.vmem [shape: f32[8,32], index: 0, kind: input, shape index: {}]   ;;  %s811_s1 = inlined_call_operand.vmem [shape: f32[8,256], index: 1, kind: input, shape index: {}]   ;;  %s812_s2 = inlined_call_operand.vmem [shape: f32[32,32], index: 2, kind: input, shape index: {}]   ;;  %s813_s3 = inlined_call_operand.vmem [shape: f32[1,32], index: 3, kind: input, shape index: {}]   ;;  %s814_s4 = inlined_call_operand.vmem [shape: f32[32,256], index: 4, kind: input, shape index: {}]   ;;  %s815_s5 = inlined_call_operand.vmem [shape: f32[1,32], index: 5, kind: input, shape index: {}]   ;;  %s816_s6 = inlined_call_operand.vmem [shape: f32[32,64], index: 6, kind: input, shape index: {}]   ;;  %s817_s7 = inlined_call_operand.vmem [shape: f32[1,64], index: 7, kind: input, shape index: {}]   ;;  %s818_s8 = inlined_call_operand.vmem [shape: f32[256,64], index: 8, kind: input, shape index: {}]   ;;  %s819_s9 = inlined_call_operand.hbm [shape: f32[8,64], index: 9, kind: output, shape index: {}]  }
   0x1   :  { %v36_v0 = vld [vmem:[%s812_s2] sm:$0xff]  ;;  %v37_v1 = vld [vmem:[%s812_s2 + $0x8] sm:$0xff]  ;;  %v38_v2 = vld [vmem:[%s812_s2 + $0x10] sm:$0xff]  ;;  %491 = vmatprep.subr.bf16.mxu0 %v573_v3  ;;  %477 = vmatprep.mubr.msk.f32.mxu0 %vm574_vm0, %v575_v6 }
   0x2   :  { %v492_v4 = vpack.c.bf16 %v37_v1, %v36_v0  ;;  %v39_v5 = vld [vmem:[%s812_s2 + $0x18] sm:$0xff]  ;;  %v122_v8 = vld [vmem:[%s816_s6] sm:$0xff]  ;;  %v123_v9 = vld [vmem:[%s816_s6 + $0x8] sm:$0xff] }
   0x3   :  { %v495_v7 = vpack.c.bf16 %v39_v5, %v38_v2 }
   0x4   :  { %493 = vmatpush3.bf16.msra.mxu0 %v492_v4 }
   0x5   :  { %494 = vmatprep.subr.bf16.mxu0 %v573_v3 }
   0x6   :  { %14 = vsyncpa [#allocation3], 0  ;;  %v33_v10 = vld [vmem:[%s810_s0] sm:$0xff]  ;;  %vm47_vm1 = vcmask 261120   ;;  %v498_v11 = vpack.c.bf16 %v123_v9, %v122_v8  ;;  %v124_v12 = vld [vmem:[%s816_s6 + $0x10] sm:$0xff]  ;;  %s576_s11 = smov [#allocation2]  }
   0x7   :  { %v125_v13 = vld [vmem:[%s816_s6 + $0x18] sm:$0xff]  ;;  %v204_v14 = vld [vmem:[%s814_s4 + $0x8] sm:$0xff]  ;;  %v203_v18 = vld [vmem:[%s814_s4] sm:$0xff]  ;;  %s410_s12 = sshll.u32 %s576_s11, 4  ;;  %vm402_vm2 = vcmask 523264   ;;  %s411_s12 = int_to_ptr.vmem [resolvable:$true] %s410_s12 }
   0x8   :  { %496 = vmatpush3.bf16.msra.mxu0 %v495_v7  ;;  %v206_v15 = vld [vmem:[%s814_s4 + $0x18] sm:$0xff]  ;;  %v501_v16 = vpack.c.bf16 %v125_v13, %v124_v12  ;;  %v205_v19 = vld [vmem:[%s814_s4 + $0x10] sm:$0xff]  ;;  %v208_v21 = vld [vmem:[%s814_s4 + $0x28] sm:$0xff]  ;;  %p554_p1 = scmp.lt.s32.totalorder %s411_s12, %s411_s12 }
   0x9   :  { %497 = vmatprep.subr.bf16.mxu0 %v573_v3  ;;  %v503_v17 = vpack.c.bf16 %v206_v15, %v204_v14  ;;  %v505_v20 = vpack.c.bf16 %v205_v19, %v203_v18  ;;  %v210_v22 = vld [vmem:[%s814_s4 + $0x38] sm:$0xff]  ;;  %v207_v24 = vld [vmem:[%s814_s4 + $0x20] sm:$0xff]  ;;  %v209_v25 = vld [vmem:[%s814_s4 + $0x30] sm:$0xff] }
   0xa   :  { %v507_v23 = vpack.c.bf16 %v210_v22, %v208_v21  ;;  %v509_v26 = vpack.c.bf16 %v209_v25, %v207_v24  ;;  %v418_v27 = vld [vmem:[%s813_s3] ss:$0 sm:$0xff]  ;;  %v315_v36 = vld [vmem:[%s818_s8 + $0x88] sm:$0xff]  ;;  %v316_v41 = vld [vmem:[%s818_s8 + $0x90] sm:$0xff] }
   0xb   :  { %478 = vmatmul.mubr.msk.f32.vlgmr.msra.gmra.mrb[0].mxu0 %vm47_vm1, %v33_v10  ;;  %v423_v31 = vld [vmem:[%s815_s5] ss:$0 sm:$0xff]  ;;  %v299_v40 = vld [vmem:[%s818_s8 + $0x8] sm:$0xff]  ;;  %v317_v42 = vld [vmem:[%s818_s8 + $0x98] sm:$0xff] }
   0xc   :  { %499 = vmatpush3.bf16.msra.mxu0 %v498_v11  ;;  %488 = vmatprep.mubr.msk.f32.mxu0 %vm574_vm0, %v575_v6  ;;  %v314_v35 = vld [vmem:[%s818_s8 + $0x80] sm:$0xff]  ;;  %v515_v45 = vpack.c.bf16 %v317_v42, %v316_v41  ;;  %v300_v46 = vld [vmem:[%s818_s8 + $0x10] sm:$0xff]  ;;  %v301_v47 = vld [vmem:[%s818_s8 + $0x18] sm:$0xff] }
   0xd   :  { %500 = vmatprep.subr.bf16.mxu0 %v573_v3  ;;  %v298_v37 = vld [vmem:[%s818_s8] sm:$0xff]  ;;  %v511_v39 = vpack.c.bf16 %v315_v36, %v314_v35  ;;  %v319_v49 = vld [vmem:[%s818_s8 + $0xa8] sm:$0xff]  ;;  %v517_v50 = vpack.c.bf16 %v301_v47, %v300_v46  ;;  %v320_v54 = vld [vmem:[%s818_s8 + $0xb0] sm:$0xff] }
   0xe   :  { %v513_v44 = vpack.c.bf16 %v299_v40, %v298_v37  ;;  %v318_v48 = vld [vmem:[%s818_s8 + $0xa0] sm:$0xff]  ;;  %v303_v53 = vld [vmem:[%s818_s8 + $0x28] sm:$0xff]  ;;  %v321_v55 = vld [vmem:[%s818_s8 + $0xb8] sm:$0xff] }
   0xf   :  { %512 = vmatprep.subr.bf16.mxu1 %v511_v39  ;;  %v519_v51 = vpack.c.bf16 %v319_v49, %v318_v48  ;;  %v302_v52 = vld [vmem:[%s818_s8 + $0x20] sm:$0xff]  ;;  %v523_v57 = vpack.c.bf16 %v321_v55, %v320_v54  ;;  %v304_v58 = vld [vmem:[%s818_s8 + $0x30] sm:$0xff]  ;;  %v305_v59 = vld [vmem:[%s818_s8 + $0x38] sm:$0xff] }
  0x10   :  { %502 = vmatpush3.bf16.msra.mxu0 %v501_v16  ;;  %514 = vmatpush3.bf16.msra.mxu1 %v513_v44  ;;  %v521_v56 = vpack.c.bf16 %v303_v53, %v302_v52  ;;  %v322_v60 = vld [vmem:[%s818_s8 + $0xc0] sm:$0xff]  ;;  %v323_v61 = vld [vmem:[%s818_s8 + $0xc8] sm:$0xff]  ;;  %v525_v62 = vpack.c.bf16 %v305_v59, %v304_v58  ;;  %v324_v2 = vld [vmem:[%s818_s8 + $0xd0] sm:$0xff] }
  0x11   :  { %504 = vmatprep.subr.bf16.mxu0 %v503_v17  ;;  %516 = vmatprep.subr.bf16.mxu1 %v515_v45  ;;  %v527_v63 = vpack.c.bf16 %v323_v61, %v322_v60  ;;  %v306_v0 = vld [vmem:[%s818_s8 + $0x40] sm:$0xff]  ;;  %v307_v1 = vld [vmem:[%s818_s8 + $0x48] sm:$0xff]  ;;  %v325_v3 = vld [vmem:[%s818_s8 + $0xd8] sm:$0xff] }
  0x12   :  { %v529_v4 = vpack.c.bf16 %v307_v1, %v306_v0  ;;  %v531_v5 = vpack.c.bf16 %v325_v3, %v324_v2  ;;  %v309_v7 = vld [vmem:[%s818_s8 + $0x58] sm:$0xff]  ;;  %v326_v8 = vld [vmem:[%s818_s8 + $0xe0] sm:$0xff]  ;;  %v327_v9 = vld [vmem:[%s818_s8 + $0xe8] sm:$0xff] }
  0x13   :  { %489 = vmatmul.mubr.msk.f32.vlgmr.msra.gmra.mrb[2].mxu0 %vm47_vm1, %v33_v10  ;;  %v535_v11 = vpack.c.bf16 %v327_v9, %v326_v8  ;;  %v310_v12 = vld [vmem:[%s818_s8 + $0x60] sm:$0xff]  ;;  %v311_v13 = vld [vmem:[%s818_s8 + $0x68] sm:$0xff]  ;;  %v328_v15 = vld [vmem:[%s818_s8 + $0xf0] sm:$0xff] }
  0x14   :  { %506 = vmatpush1.bf16.msra.mxu0 %v505_v20  ;;  %278 = vmatprep.mubr.f32.mxu0 %v575_v6  ;;  %v308_v6 = vld [vmem:[%s818_s8 + $0x50] sm:$0xff]  ;;  %v537_v14 = vpack.c.bf16 %v311_v13, %v310_v12  ;;  %v329_v16 = vld [vmem:[%s818_s8 + $0xf8] sm:$0xff]  ;;  %v35_v21 = vld [vmem:[%s811_s1 + $0x8] sm:$0xff] }
  0x15   :  { %508 = vmatprep.subr.bf16.mxu0 %v507_v23  ;;  %518 = vmatpush3.bf16.msra.mxu1 %v517_v50  ;;  %v533_v10 = vpack.c.bf16 %v309_v7, %v308_v6  ;;  %v539_v17 = vpack.c.bf16 %v329_v16, %v328_v15  ;;  %v312_v18 = vld [vmem:[%s818_s8 + $0x70] sm:$0xff]  ;;  %v313_v19 = vld [vmem:[%s818_s8 + $0x78] sm:$0xff]  ;;  %v34_v22 = vld [vmem:[%s811_s1] sm:$0xff]  ;;  %s549_s1 = scalar_lea.vmem %s411_s12, 128 }
  0x16   :  { %520 = vmatprep.subr.bf16.mxu1 %v519_v51  ;;  %v541_v20 = vpack.c.bf16 %v313_v19, %v312_v18  ;;  %p550_p0 = scmp.ne.s32.totalorder %s411_s12, %s549_s1  ;;  %p555_p2 = scmp.lt.s32.totalorder %s549_s1, %s549_s1 }
  0x18   :  { %510 = vmatpush1.bf16.msra.mxu0 %v509_v26  ;;  %p556_p3 = por %p555_p2, %p554_p1 }
  0x19   :  { %522 = vmatpush3.bf16.msra.mxu1 %v521_v56 }
  0x1a   :  { %524 = vmatprep.subr.bf16.mxu1 %v523_v57  ;;  %p557_p4 = pnand %p556_p3, %p550_p0 }
  0x1d   :  { %526 = vmatpush3.bf16.msra.mxu1 %v525_v62 }
  0x1e   :  { %528 = vmatprep.subr.bf16.mxu1 %v527_v63 }
  0x21   :  { %530 = vmatpush3.bf16.msra.mxu1 %v529_v4 }
  0x22   :  { %532 = vmatprep.subr.bf16.mxu1 %v531_v5 }
  0x25   :  { %534 = vmatpush3.bf16.msra.mxu1 %v533_v10 }
  0x26   :  { %536 = vmatprep.subr.bf16.mxu1 %v535_v11 }
  0x29   :  { %538 = vmatpush3.bf16.msra.mxu1 %v537_v14 }
  0x2a   :  { %540 = vmatprep.subr.bf16.mxu1 %v539_v17 }
  0x2d   :  { %542 = vmatpush3.bf16.msra.mxu1 %v541_v20 }
  0xde   :  { %v117_v28 = vpop.f32.mrb[0].mxu0 }
  0xdf   :  { %v118_v29 = vadd.f32 %v418_v27, %v117_v28  ;;  %v479_v30 = vpop.f32.mrb[1].mxu0 }
  0xe1   :  { %v121_v32 = vmul.f32 0.17677669, %v118_v29 }
  0xe3   :  { %422 = vmatmul.mubr.msk.f32.vlgmr.msra.gmra.mrb[4].mxu0 %vm47_vm1, %v121_v32  ;;  %v292_v33 = vmul.f32 %v423_v31, %v121_v32  ;;  %v420_v32 = vld [vmem:[%s817_s7] ss:$0 sm:$0xff] }
  0xe5   :  { %v293_v34 = vsel %vm47_vm1, %v292_v33, 0.0 }
  0xe6   :  { %294 = vadd.xlane.f32.xlu0 %v293_v34  ;;  %v699_v38 = vpop.f32.mrb[2].mxu0 }
  0xe7   :  { %v490_v43 = vpop.f32.mrb[3].mxu0  ;;  %v200_v33 = vadd.f32 %v420_v32, %v699_v38 }
 0x173   :  { %v295_v30 = vpop.xlane.xlu0 %294 }
 0x1b6   :  { %v280_v23 = vpop.f32.mrb[4].mxu0 }
 0x1b7   :  { %v282_v24 = vpop.f32.mrb[5].mxu0  ;;  %v296_v26 = vmul.f32 %v280_v23, %v34_v22 }
 0x1b8   :  { %v297_v25 = vmul.f32 %v282_v24, %v35_v21 }
 0x1ba   :  { %394 = vmatprep.mubr.f32.mxu1 %v297_v25 }
 0x1bb   :  { %395 = vmatmul.mubr.f32.vlgmr.msra.gmra.mrb[0].mxu1 %v296_v26 }
 0x28e   :  { %v466_v27 = vpop.f32.mrb[0].mxu1 }
 0x28f   :  { %v467_v28 = vpop.f32.mrb[1].mxu1 }
 0x290   :  { %v468_v29 = vadd.f32 %v467_v28, %v466_v27 }
 0x292   :  { %v397_v31 = vadd.f32 %v468_v29, %v295_v30 }
 0x294   :  { %547 = vtanh.f32 %v397_v31 }
 0x29e   :  { %v548_v34 = vpop.eup %547 }
 0x29f   :  { %v401_v35 = vmul.f32 %v548_v34, %v200_v33 }
 0x2a1   :  { %403 = vst.msk [vmem:[#allocation2] sm:$0xff] %vm402_vm2, %v401_v35 }
 0x2a2   :  { %560 = shalt.err (!%p557_p4)
}
 0x2a3   :  { %s561_s7 = scalar_lea.hbm %s819_s9, 128 }
 0x2a4   :  { %p562_p5 = scmp.ne.s32.totalorder %s819_s9, %s561_s7  ;;  %p565_p6 = scmp.lt.u32.totalorder %s561_s7, %s819_s9 }
 0x2a6   :  { %p567_p7 = pnand %p565_p6, %p562_p5 }
 0x2a8   :  { %570 = shalt.err (!%p567_p7)
}
 0x2a9   :  { %413 = dma.vmem_to_hbm [thread:$0]  %s411_s12, 128, %s819_s9, [#allocation3]  }
 0x2aa   :  { %571 = dma.done.wait [#allocation3], 128  }
 0x2ab   :  { %572 = vsyncadd [#allocation3], 4294967168 }
 0x2ac   :  { %417 = vsyncpa [#allocation3], 1 }

</bundles_post_ra>
